<compile_context>
chip_gen: v6e
topology: v6e:2x2x1
jax: 0.10.0
libtpu: 0.0.40
codegen_flags: <defaults>
</compile_context>

<pallas_src>
import math
import functools

import jax
import jax.numpy as jnp
from jax import lax
from jax.experimental import pallas as pl
from jax.experimental.pallas import tpu as pltpu


def _round_up(x, m):
    return ((x + m - 1) // m) * m


# ----------------------------------------------------------------------------
# Stage 1: dense + GELU + LayerNorm over a (tm, H) row tile.
#   x_ref f32 (cast to bf16 in-kernel), w1 bf16, b1/gamma/beta f32, h bf16 out.
# ----------------------------------------------------------------------------
def _transform_kernel(x_ref, w1_ref, b1_ref, gamma_ref, beta_ref, h_ref, *,
                      eps, approx_gelu):
    x = x_ref[...].astype(jnp.bfloat16)                      # in-VMEM cast (VPU)
    h = jnp.dot(x, w1_ref[...], preferred_element_type=jnp.float32)
    h = h + b1_ref[...]

    if approx_gelu:
        # tanh-approx GELU: transcendental rides the EUP slot. Numerics differ
        # slightly from torch's exact erf GELU — opt-in only.
        c = math.sqrt(2.0 / math.pi)
        h = 0.5 * h * (1.0 + jnp.tanh(c * (h + 0.044715 * h * h * h)))
    else:
        # exact GELU (erf form), matching torch.nn.functional.gelu default
        h = 0.5 * h * (1.0 + lax.erf(h * (1.0 / math.sqrt(2.0))))

    # One-pass LayerNorm statistics in f32: E[h], E[h^2] -> var = E[h^2]-E[h]^2
    inv_hdim = 1.0 / h.shape[-1]
    mean = jnp.sum(h, axis=-1, keepdims=True) * inv_hdim
    mean_sq = jnp.sum(h * h, axis=-1, keepdims=True) * inv_hdim
    var = jnp.maximum(mean_sq - mean * mean, 0.0)
    inv_std = lax.rsqrt(var + eps)

    h = (h - mean) * inv_std
    h_ref[...] = (h * gamma_ref[...] + beta_ref[...]).astype(h_ref.dtype)


# ----------------------------------------------------------------------------
# Stage 2: decoder matmul  (tm, H) @ (H, tn) + (1, tn)  ->  (tm, tn)
# Two variants: h resident in VMEM (sliced with pl.ds) or streamed per tile.
# ----------------------------------------------------------------------------
def _decoder_kernel_resident(h_ref, w2_ref, b2_ref, out_ref, *, tm):
    i = pl.program_id(1)                                  # inner (M) grid axis
    row0 = pl.multiple_of(i * tm, tm)
    h = h_ref[pl.ds(row0, tm), :]
    out = jnp.dot(h, w2_ref[...], preferred_element_type=jnp.float32)
    out_ref[...] = (out + b2_ref[...]).astype(out_ref.dtype)


def _decoder_kernel_streamed(h_ref, w2_ref, b2_ref, out_ref):
    out = jnp.dot(h_ref[...], w2_ref[...], preferred_element_type=jnp.float32)
    out_ref[...] = (out + b2_ref[...]).astype(out_ref.dtype)


# ----------------------------------------------------------------------------
# One-time parameter preparation (hoisted out of the per-call wrapper).
# Raw params use (in_features, out_features) layout (PyTorch weights must be
# transposed once when importing).
# ----------------------------------------------------------------------------
def prepare_params(params, *, tn=4096):
    H = params["w_dense"].shape[0]
    V = params["w_dec"].shape[1]
    tn = min(tn, _round_up(V, 128))                       # lane-aligned vocab tile
    V_pad = _round_up(V, tn)

    w2 = params["w_dec"].astype(jnp.bfloat16)
    b2 = params["b_dec"].astype(jnp.float32).reshape(1, -1)
    if V_pad != V:
        w2 = jnp.pad(w2, ((0, 0), (0, V_pad - V)))
        b2 = jnp.pad(b2, ((0, 0), (0, V_pad - V)))

    return {
        "w_dense": params["w_dense"].astype(jnp.bfloat16),
        "b_dense": params["b_dense"].astype(jnp.float32).reshape(1, H),
        "gamma": params["gamma"].astype(jnp.float32).reshape(1, H),
        "beta": params["beta"].astype(jnp.float32).reshape(1, H),
        "w_dec": w2,                                      # (H, V_pad) bf16
        "b_dec": b2,                                      # (1, V_pad) f32
        "vocab_size": V,
        "tn": tn,
    }


# ----------------------------------------------------------------------------
# Wrapper: two pallas_calls (transform, decoder).
# ----------------------------------------------------------------------------
def bert_only_mlm_head(sequence_output, prepped, *, eps=1e-12,
                       tm_transform=512, tm_dec=256,
                       approx_gelu=False, logits_dtype=jnp.float32):
    """sequence_output: (B, S, H) float32. Returns (B, S, V) logits_dtype."""
    B, S, H = sequence_output.shape
    V = prepped["vocab_size"]
    tn = prepped["tn"]
    V_pad = prepped["w_dec"].shape[1]
    M = B * S

    # Row tiles: large tile for stage 1, (sub)tile for stage 2, keeping
    # sublane alignment (16 rows for bf16) and M_pad divisible by both.
    tm1 = min(tm_transform, _round_up(M, 16))
    M_pad = _round_up(M, tm1)
    tm2 = min(tm_dec, tm1)
    if tm1 % tm2 != 0:
        tm2 = math.gcd(tm1, tm2)

    x2d = sequence_output.reshape(M, H)                   # stays f32; cast in-kernel
    if M_pad != M:
        x2d = jnp.pad(x2d, ((0, M_pad - M), (0, 0)))

    w1 = prepped["w_dense"]
    b1 = prepped["b_dense"]
    gamma = prepped["gamma"]
    beta = prepped["beta"]
    w2 = prepped["w_dec"]
    b2 = prepped["b_dec"]

    vmem_limit = 48 * 1024 * 1024                         # headroom on v7x's 64 MiB

    # --- Stage 1: transform (dense + GELU + LN), grid over row tiles ---------
    h = pl.pallas_call(
        functools.partial(_transform_kernel, eps=eps, approx_gelu=approx_gelu),
        out_shape=jax.ShapeDtypeStruct((M_pad, H), jnp.bfloat16),
        grid_spec=pltpu.PrefetchScalarGridSpec(
            num_scalar_prefetch=0,
            grid=(M_pad // tm1,),
            in_specs=[
                pl.BlockSpec((tm1, H), lambda i: (i, 0)),   # x rows (f32)
                pl.BlockSpec((H, H), lambda i: (0, 0)),     # dense weight (resident)
                pl.BlockSpec((1, H), lambda i: (0, 0)),     # dense bias
                pl.BlockSpec((1, H), lambda i: (0, 0)),     # LN gamma
                pl.BlockSpec((1, H), lambda i: (0, 0)),     # LN beta
            ],
            out_specs=pl.BlockSpec((tm1, H), lambda i: (i, 0)),
        ),
        compiler_params=pltpu.CompilerParams(
            dimension_semantics=("parallel",),
            vmem_limit_bytes=vmem_limit),
    )(x2d, w1, b1, gamma, beta)

    # --- Stage 2: decoder matmul, V OUTER (W2 streamed exactly once) ---------
    # Make the small h slab VMEM-resident when it fits; otherwise stream it.
    h_bytes = M_pad * H * 2
    h_resident = (2 * h_bytes) <= (24 * 1024 * 1024)      # incl. potential 2x buffering
    if h_resident:
        h_spec = pl.BlockSpec((M_pad, H), lambda j, i: (0, 0))    # grid-invariant
        dec_kernel = functools.partial(_decoder_kernel_resident, tm=tm2)
    else:
        h_spec = pl.BlockSpec((tm2, H), lambda j, i: (i, 0))
        dec_kernel = _decoder_kernel_streamed

    out2d = pl.pallas_call(
        dec_kernel,
        out_shape=jax.ShapeDtypeStruct((M_pad, V_pad), logits_dtype),
        grid_spec=pltpu.PrefetchScalarGridSpec(
            num_scalar_prefetch=0,
            grid=(V_pad // tn, M_pad // tm2),             # V outer, M inner
            in_specs=[
                h_spec,                                    # h (bf16)
                pl.BlockSpec((H, tn), lambda j, i: (0, j)),  # W2 vocab tile
                pl.BlockSpec((1, tn), lambda j, i: (0, j)),  # decoder bias tile
            ],
            out_specs=pl.BlockSpec((tm2, tn), lambda j, i: (i, j)),
        ),
        compiler_params=pltpu.CompilerParams(
            # V outer must carry the megacore split (each W2 tile fetched by
            # exactly one core); M inner has no reduction -> "arbitrary" safe.
            dimension_semantics=("parallel", "arbitrary"),
            vmem_limit_bytes=vmem_limit),
    )(h, w2, b2)

    return out2d[:M, :V].reshape(B, S, V)


# ----------------------------------------------------------------------------
# Parameter init + pure-JAX f32 reference (matches PyTorch module semantics)
# ----------------------------------------------------------------------------
def init_params(key, hidden_size, vocab_size):
    k1, k2, k3 = jax.random.split(key, 3)
    scale = 0.02
    return {
        # stored as (in, out): kernels do x @ W
        "w_dense": (scale * jax.random.normal(k1, (hidden_size, hidden_size))
                    ).astype(jnp.float32),
        "b_dense": (scale * jax.random.normal(k2, (1, hidden_size))
                    ).astype(jnp.float32),
        "gamma": jnp.ones((1, hidden_size), jnp.float32),   # LayerNorm weight init
        "beta": jnp.zeros((1, hidden_size), jnp.float32),   # LayerNorm bias init
        "w_dec": (scale * jax.random.normal(k3, (hidden_size, vocab_size))
                  ).astype(jnp.float32),
        "b_dec": jnp.zeros((1, vocab_size), jnp.float32),    # nn.Parameter(zeros(V))
    }


def _reference(x, p, eps=1e-12):
    h = x @ p["w_dense"] + p["b_dense"][0]
    h = 0.5 * h * (1.0 + lax.erf(h / jnp.sqrt(2.0)))
    mean = jnp.mean(h, axis=-1, keepdims=True)
    var = jnp.mean(jnp.square(h - mean), axis=-1, keepdims=True)
    h = (h - mean) / jnp.sqrt(var + eps)
    h = h * p["gamma"][0] + p["beta"][0]
    return h @ p["w_dec"] + p["b_dec"][0]


if __name__ == "__main__":
    B, S, H, V = 2, 8, 32, 128  # small BERT-ish config
    key = jax.random.PRNGKey(0)
    k_x, k_p = jax.random.split(key)

    x = jax.random.normal(k_x, (B, S, H), dtype=jnp.float32)
    params = init_params(k_p, H, V)

    # One-time parameter preparation (cast + vocab pad hoisted out of the call).
    prepped = prepare_params(params)

    out = bert_only_mlm_head(x, prepped)
    out = jax.block_until_ready(out)

    ref = _reference(x, params)
    assert out.shape == (B, S, V)
    # bf16 MXU inputs (f32 accumulation) -> looser tolerance vs pure-f32 reference
    assert jnp.allclose(out, ref, atol=2e-2, rtol=2e-2), "mismatch vs reference"

    print("KERNEL_OK")
</pallas_src>

<mosaic_0001>
module attributes {stable_mosaic.version = 11 : i64} {
  func.func @_transform_kernel(%arg0: i32, %arg1: memref<16x32xf32, #tpu.memory_space<vmem>>, %arg2: memref<32x32xbf16, #tpu.memory_space<vmem>>, %arg3: memref<1x32xf32, #tpu.memory_space<vmem>>, %arg4: memref<1x32xf32, #tpu.memory_space<vmem>>, %arg5: memref<1x32xf32, #tpu.memory_space<vmem>>, %arg6: memref<16x32xbf16, #tpu.memory_space<vmem>>) attributes {dimension_semantics = [#tpu.dimension_semantics<parallel>], iteration_bounds = array<i64: 1>, scalar_prefetch = 0 : i64, scratch_operands = 0 : i64, tpu.core_type = #tpu.core_type<tc>, window_params = [{transform_indices = @transform_0, window_bounds = array<i64: 16, 32>}, {pipeline_mode = #tpu.pipeline_mode<synchronous>, transform_indices = @transform_1, window_bounds = array<i64: 32, 32>}, {pipeline_mode = #tpu.pipeline_mode<synchronous>, transform_indices = @transform_2, window_bounds = array<i64: 1, 32>}, {pipeline_mode = #tpu.pipeline_mode<synchronous>, transform_indices = @transform_3, window_bounds = array<i64: 1, 32>}, {pipeline_mode = #tpu.pipeline_mode<synchronous>, transform_indices = @transform_4, window_bounds = array<i64: 1, 32>}, {transform_indices = @transform_5, window_bounds = array<i64: 16, 32>}]} {
    %c0 = arith.constant 0 : index
    %c0_0 = arith.constant 0 : index
    %0 = vector.load %arg1[%c0, %c0_0] : memref<16x32xf32, #tpu.memory_space<vmem>>, vector<16x32xf32>
    %1 = arith.truncf %0 : vector<16x32xf32> to vector<16x32xbf16>
    %c0_1 = arith.constant 0 : index
    %c0_2 = arith.constant 0 : index
    %2 = vector.load %arg2[%c0_1, %c0_2] : memref<32x32xbf16, #tpu.memory_space<vmem>>, vector<32x32xbf16>
    %cst = arith.constant dense<0.000000e+00> : vector<16x32xf32>
    %3 = tpu.matmul %1, %2, %cst {dimension_numbers = #tpu.dot_dimension_numbers<[1], [0], [0], [1], [0, 0, 1, 1], [], []>} : vector<16x32xbf16>, vector<32x32xbf16>, vector<16x32xf32> -> vector<16x32xf32>
    %c0_3 = arith.constant 0 : index
    %c0_4 = arith.constant 0 : index
    %4 = vector.load %arg3[%c0_3, %c0_4] : memref<1x32xf32, #tpu.memory_space<vmem>>, vector<1x32xf32>
    %5 = vector.broadcast %4 : vector<1x32xf32> to vector<16x32xf32>
    %6 = arith.addf %3, %5 : vector<16x32xf32>
    %cst_5 = arith.constant 5.000000e-01 : f32
    %7 = vector.broadcast %cst_5 : f32 to vector<16x32xf32>
    %8 = arith.mulf %7, %6 : vector<16x32xf32>
    %cst_6 = arith.constant 0.707106769 : f32
    %9 = vector.broadcast %cst_6 : f32 to vector<16x32xf32>
    %10 = arith.mulf %6, %9 : vector<16x32xf32>
    %11 = math.erf %10 : vector<16x32xf32>
    %cst_7 = arith.constant 1.000000e+00 : f32
    %12 = vector.broadcast %cst_7 : f32 to vector<16x32xf32>
    %13 = arith.addf %12, %11 : vector<16x32xf32>
    %14 = arith.mulf %8, %13 : vector<16x32xf32>
    %cst_8 = arith.constant dense<0.000000e+00> : vector<16xf32>
    %15 = vector.multi_reduction <add>, %14, %cst_8 [1] : vector<16x32xf32> to vector<16xf32>
    %16 = vector.shape_cast %15 : vector<16xf32> to vector<16x1xf32>
    %cst_9 = arith.constant 3.125000e-02 : f32
    %17 = vector.broadcast %cst_9 : f32 to vector<16x1xf32>
    %18 = arith.mulf %16, %17 : vector<16x1xf32>
    %19 = arith.mulf %14, %14 : vector<16x32xf32>
    %cst_10 = arith.constant dense<0.000000e+00> : vector<16xf32>
    %20 = vector.multi_reduction <add>, %19, %cst_10 [1] : vector<16x32xf32> to vector<16xf32>
    %21 = vector.shape_cast %20 : vector<16xf32> to vector<16x1xf32>
    %cst_11 = arith.constant 3.125000e-02 : f32
    %22 = vector.broadcast %cst_11 : f32 to vector<16x1xf32>
    %23 = arith.mulf %21, %22 : vector<16x1xf32>
    %24 = arith.mulf %18, %18 : vector<16x1xf32>
    %25 = arith.subf %23, %24 : vector<16x1xf32>
    %cst_12 = arith.constant 0.000000e+00 : f32
    %26 = vector.broadcast %cst_12 : f32 to vector<16x1xf32>
    %27 = arith.maximumf %25, %26 : vector<16x1xf32>
    %cst_13 = arith.constant 9.99999996E-13 : f32
    %28 = vector.broadcast %cst_13 : f32 to vector<16x1xf32>
    %29 = arith.addf %27, %28 : vector<16x1xf32>
    %30 = math.rsqrt %29 : vector<16x1xf32>
    %31 = vector.broadcast %18 : vector<16x1xf32> to vector<16x32xf32>
    %32 = arith.subf %14, %31 : vector<16x32xf32>
    %33 = vector.broadcast %30 : vector<16x1xf32> to vector<16x32xf32>
    %34 = arith.mulf %32, %33 : vector<16x32xf32>
    %c0_14 = arith.constant 0 : index
    %c0_15 = arith.constant 0 : index
    %35 = vector.load %arg4[%c0_14, %c0_15] : memref<1x32xf32, #tpu.memory_space<vmem>>, vector<1x32xf32>
    %36 = vector.broadcast %35 : vector<1x32xf32> to vector<16x32xf32>
    %37 = arith.mulf %34, %36 : vector<16x32xf32>
    %c0_16 = arith.constant 0 : index
    %c0_17 = arith.constant 0 : index
    %38 = vector.load %arg5[%c0_16, %c0_17] : memref<1x32xf32, #tpu.memory_space<vmem>>, vector<1x32xf32>
    %39 = vector.broadcast %38 : vector<1x32xf32> to vector<16x32xf32>
    %40 = arith.addf %37, %39 : vector<16x32xf32>
    %41 = arith.truncf %40 : vector<16x32xf32> to vector<16x32xbf16>
    %c0_18 = arith.constant 0 : index
    %c0_19 = arith.constant 0 : index
    %42 = vector.load %arg6[%c0_18, %c0_19] : memref<16x32xbf16, #tpu.memory_space<vmem>>, vector<16x32xbf16>
    tpu.vector_store %arg6[%c0_18, %c0_19], %41 {strides = array<i32>} : memref<16x32xbf16, #tpu.memory_space<vmem>>, vector<16x32xbf16>,
    return
  }
  func.func @transform_0(%arg0: i32) -> (i32, i32) {
    %c0_i32 = arith.constant 0 : i32
    %c0_i32_0 = arith.constant 0 : i32
    return %arg0, %c0_i32 : i32, i32
  }
  func.func @transform_1(%arg0: i32) -> (i32, i32) {
    %c0_i32 = arith.constant 0 : i32
    %c0_i32_0 = arith.constant 0 : i32
    %c0_i32_1 = arith.constant 0 : i32
    return %c0_i32, %c0_i32_0 : i32, i32
  }
  func.func @transform_2(%arg0: i32) -> (i32, i32) {
    %c0_i32 = arith.constant 0 : i32
    %c0_i32_0 = arith.constant 0 : i32
    %c0_i32_1 = arith.constant 0 : i32
    return %c0_i32, %c0_i32_0 : i32, i32
  }
  func.func @transform_3(%arg0: i32) -> (i32, i32) {
    %c0_i32 = arith.constant 0 : i32
    %c0_i32_0 = arith.constant 0 : i32
    %c0_i32_1 = arith.constant 0 : i32
    return %c0_i32, %c0_i32_0 : i32, i32
  }
  func.func @transform_4(%arg0: i32) -> (i32, i32) {
    %c0_i32 = arith.constant 0 : i32
    %c0_i32_0 = arith.constant 0 : i32
    %c0_i32_1 = arith.constant 0 : i32
    return %c0_i32, %c0_i32_0 : i32, i32
  }
  func.func @transform_5(%arg0: i32) -> (i32, i32) {
    %c0_i32 = arith.constant 0 : i32
    %c0_i32_0 = arith.constant 0 : i32
    return %arg0, %c0_i32 : i32, i32
  }
}

</mosaic_0001>

<bundles_post_ra>
// kernel: tpu_custom_call.1
= control target key start
LH: loop header
LB: loop body
LE: loop exit
PB: predicated region body
PF: predicated region fallthrough
CT: control target
= control target key end

     0   :  { %10 = vsyncpa [#allocation3], 0  ;;  %s384_s0 = inlined_call_operand.hbm [shape: f32[16,32], index: 0, kind: input, shape index: {}]   ;;  %s385_s1 = inlined_call_operand.hbm [shape: bf16[32,32], index: 1, kind: input, shape index: {}]   ;;  %s386_s2 = inlined_call_operand.vmem [shape: f32[1,32], index: 2, kind: input, shape index: {}]   ;;  %s387_s3 = inlined_call_operand.vmem [shape: f32[1,32], index: 3, kind: input, shape index: {}]   ;;  %s388_s4 = inlined_call_operand.vmem [shape: f32[1,32], index: 4, kind: input, shape index: {}]   ;;  %s389_s5 = inlined_call_operand.hbm [shape: bf16[16,32], index: 5, kind: output, shape index: {}]  }
   0x1   :  { %11 = vsyncpa [#allocation6], 0 }
   0x2   :  { %12 = vsyncpa [#allocation4], 0  ;;  %s316_s18 = smov [#allocation2]  }
   0x3   :  { %s18_s19 = sshll.u32 %s316_s18, 4  ;;  %s19_s19 = int_to_ptr.vmem [resolvable:$true] %s18_s19 }
   0x4   :  { %s258_s20 = scalar_lea.vmem %s19_s19, 256  ;;  %p263_p1 = scmp.lt.s32.totalorder %s19_s19, %s19_s19 }
   0x5   :  { %p259_p0 = scmp.ne.s32.totalorder %s19_s19, %s258_s20  ;;  %p264_p2 = scmp.lt.s32.totalorder %s258_s20, %s258_s20 }
   0x7   :  { %p265_p3 = por %p264_p2, %p263_p1 }
   0x9   :  { %p266_p4 = pnand %p265_p3, %p259_p0 }
   0xb   :  { %269 = shalt.err (!%p266_p4)
}
   0xc   :  { %s317_s21 = smov 128   ;;  %s318_s22 = smov 8  }
   0xd   :  { %24 = dma.hbm_to_vmem [thread:$0]  %s384_s0, 256, %s19_s19, [#allocation3], %s317_s21, %s317_s21, %s318_s22  }
   0xe   :  { %s319_s25 = smov [#allocation5]  }
   0xf   :  { %s30_s26 = sshll.u32 %s319_s25, 4  ;;  %s31_s26 = int_to_ptr.vmem [resolvable:$true] %s30_s26 }
  0x10   :  { %s278_s27 = scalar_lea.vmem %s31_s26, 256  ;;  %p283_p6 = scmp.lt.s32.totalorder %s31_s26, %s31_s26 }
  0x11   :  { %p279_p5 = scmp.ne.s32.totalorder %s31_s26, %s278_s27  ;;  %p284_p7 = scmp.lt.s32.totalorder %s278_s27, %s278_s27 }
  0x13   :  { %p285_p8 = por %p284_p7, %p283_p6 }
  0x15   :  { %p286_p9 = pnand %p285_p8, %p279_p5 }
  0x17   :  { %289 = shalt.err (!%p286_p9)
}
  0x18   :  { %s320_s28 = smov 64   ;;  %s321_s29 = smov 4  }
  0x19   :  { %36 = dma.hbm_to_vmem [thread:$0]  %s385_s1, 256, %s31_s26, [#allocation6], %s320_s28, %s320_s28, %s321_s29  }
  0x1a   :  { %310 = dma.done.wait [#allocation3], 256  }
  0x1b   :  { %311 = vsyncadd [#allocation3], 4294967040 }
  0x1c   :  { %312 = dma.done.wait [#allocation6], 256  }
  0x1d   :  { %313 = vsyncadd [#allocation6], 4294967040  ;;  %v322_v0 = vmov 0.0   ;;  %vm323_vm0 = vmmov 0   ;;  %v240_v1 = vld [vmem:[#allocation5 + $0x8] sm:$0xff]   ;;  %v241_v2 = vld [vmem:[#allocation5] sm:$0xff]  }
  0x1e   :  { %223 = vmatprep.subr.bf16.mxu0 %v322_v0  ;;  %227 = vmatprep.mubr.msk.bf16.mxu0 %vm323_vm0, %v322_v0  ;;  %v50_v3 = vld [vmem:[#allocation2] sm:$0xff]  ;;  %v51_v4 = vld [vmem:[#allocation2 + $0x8] sm:$0xff]  ;;  %vm76_vm1 = vcmask 261120   ;;  %vm189_vm2 = vcmask 257024   ;;  %s324_s10 = smov [#allocation7]  }
  0x1f   :  { %224 = vmatpush3.bf16.msra.mxu0 %v240_v1  ;;  %v52_v5 = vpack.c.bf16 %v51_v4, %v50_v3  ;;  %v210_v6 = vld [vmem:[%s386_s2] ss:$0 sm:$0xff]  ;;  %s197_s11 = sshll.u32 %s324_s10, 4  ;;  %s198_s11 = int_to_ptr.vmem [resolvable:$true] %s197_s11 }
  0x20   :  { %225 = vmatprep.subr.bf16.mxu0 %v322_v0  ;;  %v214_v47 = vld [vmem:[%s387_s3] ss:$0 sm:$0xff]  ;;  %s290_s3 = scalar_lea.vmem %s198_s11, 128  ;;  %p295_p11 = scmp.lt.s32.totalorder %s198_s11, %s198_s11 }
  0x21   :  { %v215_v49 = vld [vmem:[%s388_s4] ss:$0 sm:$0xff]  ;;  %p291_p10 = scmp.ne.s32.totalorder %s198_s11, %s290_s3  ;;  %p296_p12 = scmp.lt.s32.totalorder %s290_s3, %s290_s3 }
  0x23   :  { %226 = vmatpush3.bf16.msra.mxu0 %v241_v2  ;;  %p297_p13 = por %p296_p12, %p295_p11 }
  0x25   :  { %p298_p0 = pnand %p297_p13, %p291_p10 }
  0x26   :  { %228 = vmatmul.mubr.msk.bf16.vlgmr.msra.gmra.mxu0 %vm76_vm1, %v52_v5 }
  0xe6   :  { %v114_v7 = vpop.f32.mrf.mxu0 }
  0xe7   :  { %v115_v8 = vadd.f32 %v210_v6, %v114_v7 }
  0xe8   :  { %v229_v9 = vpop.f32.mrf.mxu0 }
  0xe9   :  { %v123_v10 = vmul.f32 0.70710677, %v115_v8  ;;  %v121_v16 = vmul.f32 0.5, %v115_v8 }
  0xea   :  { %v117_v11 = vpop.f32.mrf.mxu0 }
  0xeb   :  { %242 = verf.f32 %v123_v10  ;;  %v118_v12 = vadd.f32 %v210_v6, %v117_v11 }
  0xec   :  { %v230_v13 = vpop.f32.mrf.mxu0 }
  0xed   :  { %v124_v14 = vmul.f32 0.70710677, %v118_v12  ;;  %v122_v20 = vmul.f32 0.5, %v118_v12 }
  0xef   :  { %244 = verf.f32 %v124_v14 }
  0xf8   :  { %v243_v15 = vpop.eup %242 }
  0xf9   :  { %v127_v17 = vadd.f32 1.0, %v243_v15 }
  0xfb   :  { %v129_v18 = vmul.f32 %v127_v17, %v121_v16 }
  0xfc   :  { %v245_v19 = vpop.eup %244 }
  0xfd   :  { %v128_v21 = vadd.f32 1.0, %v245_v19  ;;  %v131_v22 = vsel %vm76_vm1, %v129_v18, 0.0  ;;  %v139_v23 = vmul.f32 %v129_v18, %v129_v18 }
  0xfe   :  { %132 = vadd.xlane.f32.xlu0 %v131_v22 }
  0xff   :  { %v130_v24 = vmul.f32 %v128_v21, %v122_v20  ;;  %v141_v25 = vsel %vm76_vm1, %v139_v23, 0.0 }
 0x100   :  { %142 = vadd.xlane.f32.xlu1 %v141_v25 }
 0x101   :  { %v134_v26 = vsel %vm76_vm1, %v130_v24, 0.0  ;;  %v140_v27 = vmul.f32 %v130_v24, %v130_v24 }
 0x102   :  { %135 = vadd.xlane.f32.xlu0 %v134_v26 }
 0x103   :  { %v144_v28 = vsel %vm76_vm1, %v140_v27, 0.0 }
 0x104   :  { %145 = vadd.xlane.f32.xlu1 %v144_v28 }
 0x187   :  { %v133_v29 = vpop.xlane.xlu0 %132 }
 0x188   :  { %v137_v30 = vmul.f32 0.03125, %v133_v29 }
 0x189   :  { %v143_v31 = vpop.xlane.xlu1 %142 }
 0x18a   :  { %v149_v32 = vmul.f32 %v137_v30, %v137_v30  ;;  %v147_v33 = vmul.f32 0.03125, %v143_v31  ;;  %v159_v45 = vsub.f32 %v129_v18, %v137_v30 }
 0x18b   :  { %v136_v34 = vpop.xlane.xlu0 %135 }
 0x18c   :  { %v151_v35 = vsub.f32 %v147_v33, %v149_v32  ;;  %v138_v36 = vmul.f32 0.03125, %v136_v34 }
 0x18d   :  { %v146_v37 = vpop.xlane.xlu1 %145 }
 0x18e   :  { %v153_v38 = vmax.f32 %v151_v35, 0.0  ;;  %v150_v39 = vmul.f32 %v138_v36, %v138_v36  ;;  %v148_v40 = vmul.f32 0.03125, %v146_v37  ;;  %v160_v50 = vsub.f32 %v130_v24, %v138_v36 }
 0x190   :  { %v155_v41 = vadd.f32 1e-12, %v153_v38  ;;  %v152_v42 = vsub.f32 %v148_v40, %v150_v39 }
 0x192   :  { %246 = vrsqrt.f32 %v155_v41  ;;  %v154_v43 = vmax.f32 %v152_v42, 0.0 }
 0x194   :  { %v156_v44 = vadd.f32 1e-12, %v154_v43 }
 0x196   :  { %248 = vrsqrt.f32 %v156_v44 }
 0x19f   :  { %v247_v46 = vpop.eup %246 }
 0x1a0   :  { %v161_v48 = vmul.f32 %v247_v46, %v159_v45 }
 0x1a2   :  { %v170_v51 = vmul.f32 %v214_v47, %v161_v48 }
 0x1a3   :  { %v249_v52 = vpop.eup %248 }
 0x1a4   :  { %v162_v53 = vmul.f32 %v249_v52, %v160_v50  ;;  %v179_v54 = vadd.f32 %v215_v49, %v170_v51 }
 0x1a6   :  { %v171_v55 = vmul.f32 %v214_v47, %v162_v53  ;;  %v218_v56 = vpack.c.bf16 %v179_v54, %v179_v54 }
 0x1a8   :  { %v180_v57 = vadd.f32 %v215_v49, %v171_v55  ;;  %190 = vst.msk [vmem:[#allocation7] sm:$0xf] %vm189_vm2, %v218_v56 }
 0x1aa   :  { %v219_v58 = vpack.c.bf16 %v180_v57, %v180_v57 }
 0x1ac   :  { %191 = vst.msk [vmem:[#allocation7 + $0x4] sm:$0xf] %vm189_vm2, %v219_v58 }
 0x1ad   :  { %301 = shalt.err (!%p298_p0)
}
 0x1ae   :  { %203 = dma.vmem_to_hbm [thread:$0]  %s198_s11, 128, %s389_s5, [#allocation4], %s320_s28, %s320_s28, %s321_s29  }
 0x1af   :  { %314 = dma.done.wait [#allocation4], 128  }
 0x1b0   :  { %315 = vsyncadd [#allocation4], 4294967168 }
 0x1b1   :  { %207 = vsyncpa [#allocation3], 1 }
 0x1b2   :  { %208 = vsyncpa [#allocation6], 1 }
 0x1b3   :  { %209 = vsyncpa [#allocation4], 1 }

</bundles_post_ra>
